<compile_context>
chip_gen: v6e
topology: v6e:2x2x1
jax: 0.10.0
libtpu: 0.0.40
codegen_flags: <defaults>
</compile_context>

<pallas_src>
import jax
import jax.numpy as jnp
from jax.experimental import pallas as pl
from jax.experimental.pallas import tpu as pltpu


def _round_up(x, m):
    return (x + m - 1) // m * m


# ------------------------------ fused glow kernel -----------------------------

def _make_glow_kernel(B, N, D, E, gnn_dims, lin_dims, layout):
    n_gnn = len(gnn_dims)
    n_lin = len(lin_dims)                 # hidden linear layers; affine head is extra

    def _param(slab_ref, key):
        off, rows, cols = layout[key]
        return slab_ref[0, off:off + rows, :cols]

    def _bn_relu(h):
        # nn.BatchNorm1d(n_node) on (B, N, C): per-node stats over (B, C), training
        # mode, identity affine, eps=1e-5; fused with ReLU.
        cnt = B * h.shape[2]
        mean = jnp.sum(jnp.sum(h, axis=2, keepdims=True), axis=0, keepdims=True) / cnt
        d = h - mean
        var = jnp.sum(jnp.sum(d * d, axis=2, keepdims=True), axis=0, keepdims=True) / cnt
        return jnp.maximum(d * jax.lax.rsqrt(var + 1e-5), 0.0)

    def _linear(h, w, b):
        # h: (B, N, Cin); w: (Cin, K); b: (1, K)  ->  (B, N, K)
        # Per-sample 2-D MXU matmuls; no per-batch broadcast of the weight.
        outs = [jnp.dot(h[i], w, preferred_element_type=jnp.float32) for i in range(B)]
        return jnp.stack(outs, axis=0) + b

    def kernel(x_ref, adj_ref, slab_ref, o_ref, ld_ref, edge_scr):
        f = pl.program_id(0)

        @pl.when(f == 0)
        def _():
            o_ref[...] = x_ref[...]          # seed the VMEM-resident carried state
            ld_ref[...] = jnp.zeros_like(ld_ref)

        x = o_ref[...]                       # (B, N, D): output of the previous flow

        # ---------------- ActNorm2D (data-dependent init on this batch) ---------
        cnt = B * D
        mean = jnp.sum(jnp.sum(x, axis=2, keepdims=True), axis=0, keepdims=True) / cnt
        d = x - mean
        sq = jnp.sum(jnp.sum(d * d, axis=2, keepdims=True), axis=0, keepdims=True)
        std = jnp.sqrt(sq / (cnt - 1))       # unbiased, matches torch.std
        scale = 1.0 / (std + 1e-6)           # (1, N, 1);  loc = -mean
        out_act = scale * d                  # scale * (x + loc)
        ld_act = float(D) * jnp.sum(jnp.log(jnp.abs(scale)), axis=1)       # (1, 1)

        mask = _param(slab_ref, 'mask')      # (N, D), unpacked from the slab
        masked_x = mask[None] * out_act      # (B, N, D)

        # ---------------- s,t network: GraphConv+BN+ReLU, GraphLinear+BN+ReLU ---
        adj = adj_ref[...]                   # (B, N, E*N): adj[b,n,e*N+m]
        h = masked_x
        for li in range(n_gnn):
            cout = gnn_dims[li]
            w = _param(slab_ref, ('gnn_w', li))   # (Cin,(E+1)*cout) = [self|W_0..W_{E-1}]
            b = _param(slab_ref, ('gnn_b', li))   # (1, (E+1)*cout)
            m3 = _linear(h, w, b)                 # combined self + edge transforms
            # Assemble the (B, E*N, cout) operand of the fused edge contraction.
            for e in range(E):
                edge_scr[:, e * N:(e + 1) * N, :cout] = (
                    m3[:, :, (e + 1) * cout:(e + 2) * cout])
            agg = m3[:, :, :cout] + jnp.einsum(
                'bnk,bkc->bnc', adj, edge_scr[:, :, :cout],
                preferred_element_type=jnp.float32)
            h = _bn_relu(agg)

        for li in range(n_lin):
            w = _param(slab_ref, ('lin_w', li))
            b = _param(slab_ref, ('lin_b', li))
            h = _bn_relu(_linear(h, w, b))

        w = _param(slab_ref, ('lin_w', n_lin))    # (Clast, 2*D) affine head
        b = _param(slab_ref, ('lin_b', n_lin))
        st = _linear(h, w, b)                     # (B, N, 2*D)

        log_s = st[..., :D]                       # torch chunk(2, dim=-1)
        t = st[..., D:]
        s = jax.nn.sigmoid(log_s)

        # ---------------- affine coupling combine + per-sample logdet -----------
        out = masked_x + (1.0 - mask[None]) * (out_act + t) * s
        # log|s| = log(sigmoid(log_s)) = log_sigmoid(log_s)  (stable, no underflow)
        la = jnp.minimum(log_s, 0.0) - jnp.log(1.0 + jnp.exp(-jnp.abs(log_s)))
        ld_coup = jnp.sum(jnp.sum(la, axis=2), axis=1, keepdims=True)      # (B, 1)

        ld_ref[...] = ld_ref[...] + ld_act + ld_coup
        o_ref[...] = out                          # carried into the next flow

    return kernel


# --------------------------------- wrapper ------------------------------------

def glow_forward(params, adj, x):
    B, N, D = x.shape
    E = adj.shape[1]
    gnn_dims = params['gnn_dims']
    lin_dims = params['lin_dims']
    layout = params['layout']
    slab = params['slab']                         # (F, R, Cpad): all per-flow params
    F, R, Cpad = slab.shape

    # adjacency re-layout, once, outside the kernel: adj_flat[b,n,e*N+m] = adj[b,e,n,m]
    adj_flat = jnp.transpose(adj, (0, 2, 1, 3)).reshape(B, N, E * N)

    kernel = _make_glow_kernel(B, N, D, E, gnn_dims, lin_dims, layout)
    c_gnn_max = max(gnn_dims) if len(gnn_dims) else 1

    out, ld = pl.pallas_call(
        kernel,
        out_shape=(jax.ShapeDtypeStruct((B, N, D), jnp.float32),
                   jax.ShapeDtypeStruct((B, 128), jnp.float32)),
        grid=(F,),
        in_specs=[
            pl.BlockSpec((B, N, D), lambda f: (0, 0, 0)),        # x (constant block)
            pl.BlockSpec((B, N, E * N), lambda f: (0, 0, 0)),    # adj (constant block)
            pl.BlockSpec((1, R, Cpad), lambda f: (f, 0, 0)),     # per-flow param slab
        ],
        out_specs=(pl.BlockSpec((B, N, D), lambda f: (0, 0, 0)),   # carried activation
                   pl.BlockSpec((B, 128), lambda f: (0, 0))),      # accumulated logdet
        scratch_shapes=[pltpu.VMEM((B, E * N, c_gnn_max), jnp.float32)],
        compiler_params=pltpu.CompilerParams(dimension_semantics=("arbitrary",)),
    )(x, adj_flat, slab)
    return out, ld[:, 0]


# ------------------------- parameter construction ----------------------------

def init_glow_params(key, n_node, in_dim, hidden_dim_dict, n_flow, n_block,
                     mask_row_size_list, mask_row_stride_list, n_edge):
    if len(mask_row_size_list) == 1:
        mask_row_size_list = mask_row_size_list * n_block
    if len(mask_row_stride_list) == 1:
        mask_row_stride_list = mask_row_stride_list * n_block

    gnn_dims = tuple(hidden_dim_dict['gnn'])
    lin_dims = tuple(hidden_dim_dict['linear'])
    head_dims = list(lin_dims) + [in_dim * 2]        # affine=True head appended

    # ---- slab layout (row offset, rows, cols) shared by all flows ----
    layout = {}
    off = 0

    def _alloc(k, rows, cols):
        nonlocal off
        layout[k] = (off, rows, cols)
        off += _round_up(rows, 8)                    # keep slices sublane-aligned
        return cols

    max_cols = _alloc('mask', n_node, in_dim)
    last = in_dim
    for li, cout in enumerate(gnn_dims):
        max_cols = max(max_cols, _alloc(('gnn_w', li), last, (n_edge + 1) * cout))
        max_cols = max(max_cols, _alloc(('gnn_b', li), 1, (n_edge + 1) * cout))
        last = cout
    for li, cout in enumerate(head_dims):
        max_cols = max(max_cols, _alloc(('lin_w', li), last, cout))
        max_cols = max(max_cols, _alloc(('lin_b', li), 1, cout))
        last = cout
    R = _round_up(off, 8)
    Cpad = _round_up(max_cols, 128)

    slabs = []
    for bi in range(n_block):
        mrs, mstride = mask_row_size_list[bi], mask_row_stride_list[bi]
        for fi in range(n_flow):
            slab = jnp.zeros((R, Cpad), jnp.float32)

            start = fi * mstride
            masked_row = [r % n_node for r in range(start, start + mrs)]
            mask = jnp.ones((n_node, in_dim), jnp.float32)
            mask = mask.at[jnp.array(masked_row)].set(0.0)
            o, r, c = layout['mask']
            slab = slab.at[o:o + r, :c].set(mask)

            last = in_dim
            for li, cout in enumerate(gnn_dims):
                key, k1, k2 = jax.random.split(key, 3)
                w_self = jax.random.normal(k1, (last, cout), jnp.float32) * 0.1
                w_edge = jax.random.normal(k2, (last, n_edge * cout), jnp.float32) * 0.1
                o, r, c = layout[('gnn_w', li)]
                slab = slab.at[o:o + r, :c].set(jnp.concatenate([w_self, w_edge], 1))
                # biases are zero -> slab already zero at ('gnn_b', li)
                last = cout
            for li, cout in enumerate(head_dims):
                key, k1 = jax.random.split(key)
                w = jax.random.normal(k1, (last, cout), jnp.float32) * 0.1
                o, r, c = layout[('lin_w', li)]
                slab = slab.at[o:o + r, :c].set(w)
                last = cout
            slabs.append(slab)

    return dict(
        gnn_dims=gnn_dims,
        lin_dims=lin_dims,
        layout=layout,
        slab=jnp.stack(slabs, axis=0),               # (F, R, Cpad)
    )


# ---------------------------------- main --------------------------------------

if __name__ == "__main__":
    key = jax.random.PRNGKey(0)
    B, N, D, E = 2, 9, 5, 4                          # batch, n_node, in_dim, edge types
    hidden_dim_dict = {'gnn': [16], 'linear': [8]}
    n_flow, n_block = 2, 2

    k_x, k_adj, k_p = jax.random.split(key, 3)
    x = jax.random.normal(k_x, (B, N, D), jnp.float32)
    adj = jax.random.uniform(k_adj, (B, E, N, N), jnp.float32)

    params = init_glow_params(k_p, N, D, hidden_dim_dict, n_flow, n_block,
                              mask_row_size_list=[2], mask_row_stride_list=[1], n_edge=E)

    out, logdet = glow_forward(params, adj, x)
    jax.block_until_ready((out, logdet))
    assert out.shape == (B, N, D) and logdet.shape == (B,)
    print("KERNEL_OK")
</pallas_src>

<mosaic_0001>
module attributes {stable_mosaic.version = 11 : i64} {
  func.func @kernel(%arg0: i32, %arg1: memref<2x9x5xf32, #tpu.memory_space<vmem>>, %arg2: memref<2x9x36xf32, #tpu.memory_space<vmem>>, %arg3: memref<1x72x128xf32, #tpu.memory_space<vmem>>, %arg4: memref<2x9x5xf32, #tpu.memory_space<vmem>>, %arg5: memref<2x128xf32, #tpu.memory_space<vmem>>, %arg6: memref<2x36x16xf32, #tpu.memory_space<vmem>>) attributes {dimension_semantics = [#tpu.dimension_semantics<arbitrary>], iteration_bounds = array<i64: 4>, scalar_prefetch = 0 : i64, scratch_operands = 1 : i64, tpu.core_type = #tpu.core_type<tc>, window_params = [{pipeline_mode = #tpu.pipeline_mode<synchronous>, transform_indices = @transform_0, window_bounds = array<i64: 2, 9, 5>}, {pipeline_mode = #tpu.pipeline_mode<synchronous>, transform_indices = @transform_1, window_bounds = array<i64: 2, 9, 36>}, {transform_indices = @transform_2, window_bounds = array<i64: 1, 72, 128>}, {pipeline_mode = #tpu.pipeline_mode<synchronous>, transform_indices = @transform_3, window_bounds = array<i64: 2, 9, 5>}, {pipeline_mode = #tpu.pipeline_mode<synchronous>, transform_indices = @transform_4, window_bounds = array<i64: 2, 128>}]} {
    %c0_i32 = arith.constant 0 : i32
    %0 = arith.cmpi eq, %arg0, %c0_i32 : i32
    %1 = arith.extui %0 : i1 to i32
    %c0_i32_0 = arith.constant 0 : i32
    %2 = arith.cmpi ne, %1, %c0_i32_0 : i32
    scf.if %2 {
      %c0_79 = arith.constant 0 : index
      %c0_80 = arith.constant 0 : index
      %c0_81 = arith.constant 0 : index
      %176 = vector.load %arg1[%c0_79, %c0_80, %c0_81] : memref<2x9x5xf32, #tpu.memory_space<vmem>>, vector<2x9x5xf32>
      %c0_82 = arith.constant 0 : index
      %c0_83 = arith.constant 0 : index
      %c0_84 = arith.constant 0 : index
      %177 = vector.load %arg4[%c0_82, %c0_83, %c0_84] : memref<2x9x5xf32, #tpu.memory_space<vmem>>, vector<2x9x5xf32>
      tpu.vector_store %arg4[%c0_82, %c0_83, %c0_84], %176 {strides = array<i32>} : memref<2x9x5xf32, #tpu.memory_space<vmem>>, vector<2x9x5xf32>,
      %cst_85 = arith.constant 0.000000e+00 : f32
      %178 = vector.broadcast %cst_85 : f32 to vector<2x128xf32>
      %c0_86 = arith.constant 0 : index
      %c0_87 = arith.constant 0 : index
      %179 = vector.load %arg5[%c0_86, %c0_87] : memref<2x128xf32, #tpu.memory_space<vmem>>, vector<2x128xf32>
      tpu.vector_store %arg5[%c0_86, %c0_87], %178 {strides = array<i32>} : memref<2x128xf32, #tpu.memory_space<vmem>>, vector<2x128xf32>,
    } else {
    }
    %c0 = arith.constant 0 : index
    %c0_1 = arith.constant 0 : index
    %c0_2 = arith.constant 0 : index
    %3 = vector.load %arg4[%c0, %c0_1, %c0_2] : memref<2x9x5xf32, #tpu.memory_space<vmem>>, vector<2x9x5xf32>
    %cst = arith.constant dense<0.000000e+00> : vector<2x9xf32>
    %4 = vector.multi_reduction <add>, %3, %cst [2] : vector<2x9x5xf32> to vector<2x9xf32>
    %5 = vector.shape_cast %4 : vector<2x9xf32> to vector<2x9x1xf32>
    %cst_3 = arith.constant dense<0.000000e+00> : vector<9x1xf32>
    %6 = vector.multi_reduction <add>, %5, %cst_3 [0] : vector<2x9x1xf32> to vector<9x1xf32>
    %7 = vector.shape_cast %6 : vector<9x1xf32> to vector<1x9x1xf32>
    %cst_4 = arith.constant 1.000000e+01 : f32
    %8 = vector.broadcast %cst_4 : f32 to vector<1x9x1xf32>
    %9 = arith.divf %7, %8 : vector<1x9x1xf32>
    %10 = vector.broadcast %9 : vector<1x9x1xf32> to vector<2x9x5xf32>
    %11 = arith.subf %3, %10 : vector<2x9x5xf32>
    %12 = arith.mulf %11, %11 : vector<2x9x5xf32>
    %cst_5 = arith.constant dense<0.000000e+00> : vector<2x9xf32>
    %13 = vector.multi_reduction <add>, %12, %cst_5 [2] : vector<2x9x5xf32> to vector<2x9xf32>
    %14 = vector.shape_cast %13 : vector<2x9xf32> to vector<2x9x1xf32>
    %cst_6 = arith.constant dense<0.000000e+00> : vector<9x1xf32>
    %15 = vector.multi_reduction <add>, %14, %cst_6 [0] : vector<2x9x1xf32> to vector<9x1xf32>
    %16 = vector.shape_cast %15 : vector<9x1xf32> to vector<1x9x1xf32>
    %cst_7 = arith.constant 9.000000e+00 : f32
    %17 = vector.broadcast %cst_7 : f32 to vector<1x9x1xf32>
    %18 = arith.divf %16, %17 : vector<1x9x1xf32>
    %19 = math.sqrt %18 : vector<1x9x1xf32>
    %cst_8 = arith.constant 9.99999997E-7 : f32
    %20 = vector.broadcast %cst_8 : f32 to vector<1x9x1xf32>
    %21 = arith.addf %19, %20 : vector<1x9x1xf32>
    %cst_9 = arith.constant 1.000000e+00 : f32
    %22 = vector.broadcast %cst_9 : f32 to vector<1x9x1xf32>
    %23 = arith.divf %22, %21 : vector<1x9x1xf32>
    %24 = vector.broadcast %23 : vector<1x9x1xf32> to vector<2x9x5xf32>
    %25 = arith.mulf %24, %11 : vector<2x9x5xf32>
    %26 = math.absf %23 : vector<1x9x1xf32>
    %27 = math.log %26 : vector<1x9x1xf32>
    %cst_10 = arith.constant dense<0.000000e+00> : vector<1x1xf32>
    %28 = vector.multi_reduction <add>, %27, %cst_10 [1] : vector<1x9x1xf32> to vector<1x1xf32>
    %cst_11 = arith.constant 5.000000e+00 : f32
    %29 = vector.broadcast %cst_11 : f32 to vector<1x1xf32>
    %30 = arith.mulf %29, %28 : vector<1x1xf32>
    %c0_12 = arith.constant 0 : index
    %c0_13 = arith.constant 0 : index
    %c0_14 = arith.constant 0 : index
    %31 = vector.load %arg3[%c0_12, %c0_13, %c0_14] : memref<1x72x128xf32, #tpu.memory_space<vmem>>, vector<1x9x5xf32>
    %32 = vector.shape_cast %31 : vector<1x9x5xf32> to vector<9x5xf32>
    %33 = vector.shape_cast %32 : vector<9x5xf32> to vector<1x9x5xf32>
    %34 = vector.broadcast %33 : vector<1x9x5xf32> to vector<2x9x5xf32>
    %35 = arith.mulf %34, %25 : vector<2x9x5xf32>
    %c0_15 = arith.constant 0 : index
    %c0_16 = arith.constant 0 : index
    %c0_17 = arith.constant 0 : index
    %36 = vector.load %arg2[%c0_15, %c0_16, %c0_17] : memref<2x9x36xf32, #tpu.memory_space<vmem>>, vector<2x9x36xf32>
    %c0_18 = arith.constant 0 : index
    %c16 = arith.constant 16 : index
    %c0_19 = arith.constant 0 : index
    %37 = vector.load %arg3[%c0_18, %c16, %c0_19] : memref<1x72x128xf32, #tpu.memory_space<vmem>>, vector<1x5x80xf32>
    %38 = vector.shape_cast %37 : vector<1x5x80xf32> to vector<5x80xf32>
    %c0_20 = arith.constant 0 : index
    %c24 = arith.constant 24 : index
    %c0_21 = arith.constant 0 : index
    %39 = vector.load %arg3[%c0_20, %c24, %c0_21] : memref<1x72x128xf32, #tpu.memory_space<vmem>>, vector<1x1x80xf32>
    %40 = vector.shape_cast %39 : vector<1x1x80xf32> to vector<1x80xf32>
    %41 = vector.extract_strided_slice %35 {offsets = [0, 0, 0], sizes = [1, 9, 5], strides = [1, 1, 1]} : vector<2x9x5xf32> to vector<1x9x5xf32>
    %42 = vector.shape_cast %41 : vector<1x9x5xf32> to vector<9x5xf32>
    %cst_22 = arith.constant dense<0.000000e+00> : vector<9x80xf32>
    %43 = tpu.matmul %42, %38, %cst_22 {dimension_numbers = #tpu.dot_dimension_numbers<[1], [0], [0], [1], [0, 0, 1, 1], [], []>} : vector<9x5xf32>, vector<5x80xf32>, vector<9x80xf32> -> vector<9x80xf32>
    %44 = vector.extract_strided_slice %35 {offsets = [1, 0, 0], sizes = [1, 9, 5], strides = [1, 1, 1]} : vector<2x9x5xf32> to vector<1x9x5xf32>
    %45 = vector.shape_cast %44 : vector<1x9x5xf32> to vector<9x5xf32>
    %cst_23 = arith.constant dense<0.000000e+00> : vector<9x80xf32>
    %46 = tpu.matmul %45, %38, %cst_23 {dimension_numbers = #tpu.dot_dimension_numbers<[1], [0], [0], [1], [0, 0, 1, 1], [], []>} : vector<9x5xf32>, vector<5x80xf32>, vector<9x80xf32> -> vector<9x80xf32>
    %47 = vector.shape_cast %43 : vector<9x80xf32> to vector<1x9x80xf32>
    %48 = vector.shape_cast %46 : vector<9x80xf32> to vector<1x9x80xf32>
    %49 = tpu.concatenate %47, %48 in 0 : vector<1x9x80xf32>, vector<1x9x80xf32> -> vector<2x9x80xf32>
    %50 = vector.shape_cast %40 : vector<1x80xf32> to vector<1x1x80xf32>
    %51 = vector.broadcast %50 : vector<1x1x80xf32> to vector<2x9x80xf32>
    %52 = arith.addf %49, %51 : vector<2x9x80xf32>
    %53 = vector.extract_strided_slice %52 {offsets = [0, 0, 16], sizes = [2, 9, 16], strides = [1, 1, 1]} : vector<2x9x80xf32> to vector<2x9x16xf32>
    %c0_24 = arith.constant 0 : index
    %c0_25 = arith.constant 0 : index
    %c0_26 = arith.constant 0 : index
    %54 = vector.load %arg6[%c0_24, %c0_25, %c0_26] : memref<2x36x16xf32, #tpu.memory_space<vmem>>, vector<2x9x16xf32>
    tpu.vector_store %arg6[%c0_24, %c0_25, %c0_26], %53 {strides = array<i32>} : memref<2x36x16xf32, #tpu.memory_space<vmem>>, vector<2x9x16xf32>,
    %55 = vector.extract_strided_slice %52 {offsets = [0, 0, 32], sizes = [2, 9, 16], strides = [1, 1, 1]} : vector<2x9x80xf32> to vector<2x9x16xf32>
    %c0_27 = arith.constant 0 : index
    %c9 = arith.constant 9 : index
    %c0_28 = arith.constant 0 : index
    %56 = vector.load %arg6[%c0_27, %c9, %c0_28] : memref<2x36x16xf32, #tpu.memory_space<vmem>>, vector<2x9x16xf32>
    tpu.vector_store %arg6[%c0_27, %c9, %c0_28], %55 {strides = array<i32>} : memref<2x36x16xf32, #tpu.memory_space<vmem>>, vector<2x9x16xf32>,
    %57 = vector.extract_strided_slice %52 {offsets = [0, 0, 48], sizes = [2, 9, 16], strides = [1, 1, 1]} : vector<2x9x80xf32> to vector<2x9x16xf32>
    %c0_29 = arith.constant 0 : index
    %c18 = arith.constant 18 : index
    %c0_30 = arith.constant 0 : index
    %58 = vector.load %arg6[%c0_29, %c18, %c0_30] : memref<2x36x16xf32, #tpu.memory_space<vmem>>, vector<2x9x16xf32>
    tpu.vector_store %arg6[%c0_29, %c18, %c0_30], %57 {strides = array<i32>} : memref<2x36x16xf32, #tpu.memory_space<vmem>>, vector<2x9x16xf32>,
    %59 = vector.extract_strided_slice %52 {offsets = [0, 0, 64], sizes = [2, 9, 16], strides = [1, 1, 1]} : vector<2x9x80xf32> to vector<2x9x16xf32>
    %c0_31 = arith.constant 0 : index
    %c27 = arith.constant 27 : index
    %c0_32 = arith.constant 0 : index
    %60 = vector.load %arg6[%c0_31, %c27, %c0_32] : memref<2x36x16xf32, #tpu.memory_space<vmem>>, vector<2x9x16xf32>
    tpu.vector_store %arg6[%c0_31, %c27, %c0_32], %59 {strides = array<i32>} : memref<2x36x16xf32, #tpu.memory_space<vmem>>, vector<2x9x16xf32>,
    %61 = vector.extract_strided_slice %52 {offsets = [0, 0, 0], sizes = [2, 9, 16], strides = [1, 1, 1]} : vector<2x9x80xf32> to vector<2x9x16xf32>
    %c0_33 = arith.constant 0 : index
    %c0_34 = arith.constant 0 : index
    %c0_35 = arith.constant 0 : index
    %62 = vector.load %arg6[%c0_33, %c0_34, %c0_35] : memref<2x36x16xf32, #tpu.memory_space<vmem>>, vector<2x36x16xf32>
    "tpu.trace_start"() <{level = 10 : i32, message = "bnk,bkc->bnc"}> : () -> ()
    %cst_36 = arith.constant dense<0.000000e+00> : vector<2x9x16xf32>
    %63 = tpu.matmul %36, %62, %cst_36 {dimension_numbers = #tpu.dot_dimension_numbers<[2], [1], [1], [2], [0, 0, 0, 1, 1, 2], [0], [0]>} : vector<2x9x36xf32>, vector<2x36x16xf32>, vector<2x9x16xf32> -> vector<2x9x16xf32>
    "tpu.trace_stop"() : () -> ()
    %64 = arith.addf %61, %63 : vector<2x9x16xf32>
    %cst_37 = arith.constant dense<0.000000e+00> : vector<2x9xf32>
    %65 = vector.multi_reduction <add>, %64, %cst_37 [2] : vector<2x9x16xf32> to vector<2x9xf32>
    %66 = vector.shape_cast %65 : vector<2x9xf32> to vector<2x9x1xf32>
    %cst_38 = arith.constant dense<0.000000e+00> : vector<9x1xf32>
    %67 = vector.multi_reduction <add>, %66, %cst_38 [0] : vector<2x9x1xf32> to vector<9x1xf32>
    %68 = vector.shape_cast %67 : vector<9x1xf32> to vector<1x9x1xf32>
    %cst_39 = arith.constant 3.200000e+01 : f32
    %69 = vector.broadcast %cst_39 : f32 to vector<1x9x1xf32>
    %70 = arith.divf %68, %69 : vector<1x9x1xf32>
    %71 = vector.broadcast %70 : vector<1x9x1xf32> to vector<2x9x16xf32>
    %72 = arith.subf %64, %71 : vector<2x9x16xf32>
    %73 = arith.mulf %72, %72 : vector<2x9x16xf32>
    %cst_40 = arith.constant dense<0.000000e+00> : vector<2x9xf32>
    %74 = vector.multi_reduction <add>, %73, %cst_40 [2] : vector<2x9x16xf32> to vector<2x9xf32>
    %75 = vector.shape_cast %74 : vector<2x9xf32> to vector<2x9x1xf32>
    %cst_41 = arith.constant dense<0.000000e+00> : vector<9x1xf32>
    %76 = vector.multi_reduction <add>, %75, %cst_41 [0] : vector<2x9x1xf32> to vector<9x1xf32>
    %77 = vector.shape_cast %76 : vector<9x1xf32> to vector<1x9x1xf32>
    %cst_42 = arith.constant 3.200000e+01 : f32
    %78 = vector.broadcast %cst_42 : f32 to vector<1x9x1xf32>
    %79 = arith.divf %77, %78 : vector<1x9x1xf32>
    %cst_43 = arith.constant 9.99999974E-6 : f32
    %80 = vector.broadcast %cst_43 : f32 to vector<1x9x1xf32>
    %81 = arith.addf %79, %80 : vector<1x9x1xf32>
    %82 = math.rsqrt %81 : vector<1x9x1xf32>
    %83 = vector.broadcast %82 : vector<1x9x1xf32> to vector<2x9x16xf32>
    %84 = arith.mulf %72, %83 : vector<2x9x16xf32>
    %cst_44 = arith.constant 0.000000e+00 : f32
    %85 = vector.broadcast %cst_44 : f32 to vector<2x9x16xf32>
    %86 = arith.maximumf %84, %85 : vector<2x9x16xf32>
    %c0_45 = arith.constant 0 : index
    %c32 = arith.constant 32 : index
    %c0_46 = arith.constant 0 : index
    %87 = vector.load %arg3[%c0_45, %c32, %c0_46] : memref<1x72x128xf32, #tpu.memory_space<vmem>>, vector<1x16x8xf32>
    %88 = vector.shape_cast %87 : vector<1x16x8xf32> to vector<16x8xf32>
    %c0_47 = arith.constant 0 : index
    %c48 = arith.constant 48 : index
    %c0_48 = arith.constant 0 : index
    %89 = vector.load %arg3[%c0_47, %c48, %c0_48] : memref<1x72x128xf32, #tpu.memory_space<vmem>>, vector<1x1x8xf32>
    %90 = vector.shape_cast %89 : vector<1x1x8xf32> to vector<1x8xf32>
    %91 = vector.extract_strided_slice %86 {offsets = [0, 0, 0], sizes = [1, 9, 16], strides = [1, 1, 1]} : vector<2x9x16xf32> to vector<1x9x16xf32>
    %92 = vector.shape_cast %91 : vector<1x9x16xf32> to vector<9x16xf32>
    %cst_49 = arith.constant dense<0.000000e+00> : vector<9x8xf32>
    %93 = tpu.matmul %92, %88, %cst_49 {dimension_numbers = #tpu.dot_dimension_numbers<[1], [0], [0], [1], [0, 0, 1, 1], [], []>} : vector<9x16xf32>, vector<16x8xf32>, vector<9x8xf32> -> vector<9x8xf32>
    %94 = vector.extract_strided_slice %86 {offsets = [1, 0, 0], sizes = [1, 9, 16], strides = [1, 1, 1]} : vector<2x9x16xf32> to vector<1x9x16xf32>
    %95 = vector.shape_cast %94 : vector<1x9x16xf32> to vector<9x16xf32>
    %cst_50 = arith.constant dense<0.000000e+00> : vector<9x8xf32>
    %96 = tpu.matmul %95, %88, %cst_50 {dimension_numbers = #tpu.dot_dimension_numbers<[1], [0], [0], [1], [0, 0, 1, 1], [], []>} : vector<9x16xf32>, vector<16x8xf32>, vector<9x8xf32> -> vector<9x8xf32>
    %97 = vector.shape_cast %93 : vector<9x8xf32> to vector<1x9x8xf32>
    %98 = vector.shape_cast %96 : vector<9x8xf32> to vector<1x9x8xf32>
    %99 = tpu.concatenate %97, %98 in 0 : vector<1x9x8xf32>, vector<1x9x8xf32> -> vector<2x9x8xf32>
    %100 = vector.shape_cast %90 : vector<1x8xf32> to vector<1x1x8xf32>
    %101 = vector.broadcast %100 : vector<1x1x8xf32> to vector<2x9x8xf32>
    %102 = arith.addf %99, %101 : vector<2x9x8xf32>
    %cst_51 = arith.constant dense<0.000000e+00> : vector<2x9xf32>
    %103 = vector.multi_reduction <add>, %102, %cst_51 [2] : vector<2x9x8xf32> to vector<2x9xf32>
    %104 = vector.shape_cast %103 : vector<2x9xf32> to vector<2x9x1xf32>
    %cst_52 = arith.constant dense<0.000000e+00> : vector<9x1xf32>
    %105 = vector.multi_reduction <add>, %104, %cst_52 [0] : vector<2x9x1xf32> to vector<9x1xf32>
    %106 = vector.shape_cast %105 : vector<9x1xf32> to vector<1x9x1xf32>
    %cst_53 = arith.constant 1.600000e+01 : f32
    %107 = vector.broadcast %cst_53 : f32 to vector<1x9x1xf32>
    %108 = arith.divf %106, %107 : vector<1x9x1xf32>
    %109 = vector.broadcast %108 : vector<1x9x1xf32> to vector<2x9x8xf32>
    %110 = arith.subf %102, %109 : vector<2x9x8xf32>
    %111 = arith.mulf %110, %110 : vector<2x9x8xf32>
    %cst_54 = arith.constant dense<0.000000e+00> : vector<2x9xf32>
    %112 = vector.multi_reduction <add>, %111, %cst_54 [2] : vector<2x9x8xf32> to vector<2x9xf32>
    %113 = vector.shape_cast %112 : vector<2x9xf32> to vector<2x9x1xf32>
    %cst_55 = arith.constant dense<0.000000e+00> : vector<9x1xf32>
    %114 = vector.multi_reduction <add>, %113, %cst_55 [0] : vector<2x9x1xf32> to vector<9x1xf32>
    %115 = vector.shape_cast %114 : vector<9x1xf32> to vector<1x9x1xf32>
    %cst_56 = arith.constant 1.600000e+01 : f32
    %116 = vector.broadcast %cst_56 : f32 to vector<1x9x1xf32>
    %117 = arith.divf %115, %116 : vector<1x9x1xf32>
    %cst_57 = arith.constant 9.99999974E-6 : f32
    %118 = vector.broadcast %cst_57 : f32 to vector<1x9x1xf32>
    %119 = arith.addf %117, %118 : vector<1x9x1xf32>
    %120 = math.rsqrt %119 : vector<1x9x1xf32>
    %121 = vector.broadcast %120 : vector<1x9x1xf32> to vector<2x9x8xf32>
    %122 = arith.mulf %110, %121 : vector<2x9x8xf32>
    %cst_58 = arith.constant 0.000000e+00 : f32
    %123 = vector.broadcast %cst_58 : f32 to vector<2x9x8xf32>
    %124 = arith.maximumf %122, %123 : vector<2x9x8xf32>
    %c0_59 = arith.constant 0 : index
    %c56 = arith.constant 56 : index
    %c0_60 = arith.constant 0 : index
    %125 = vector.load %arg3[%c0_59, %c56, %c0_60] : memref<1x72x128xf32, #tpu.memory_space<vmem>>, vector<1x8x10xf32>
    %126 = vector.shape_cast %125 : vector<1x8x10xf32> to vector<8x10xf32>
    %c0_61 = arith.constant 0 : index
    %c64 = arith.constant 64 : index
    %c0_62 = arith.constant 0 : index
    %127 = vector.load %arg3[%c0_61, %c64, %c0_62] : memref<1x72x128xf32, #tpu.memory_space<vmem>>, vector<1x1x10xf32>
    %128 = vector.shape_cast %127 : vector<1x1x10xf32> to vector<1x10xf32>
    %129 = vector.extract_strided_slice %124 {offsets = [0, 0, 0], sizes = [1, 9, 8], strides = [1, 1, 1]} : vector<2x9x8xf32> to vector<1x9x8xf32>
    %130 = vector.shape_cast %129 : vector<1x9x8xf32> to vector<9x8xf32>
    %cst_63 = arith.constant dense<0.000000e+00> : vector<9x10xf32>
    %131 = tpu.matmul %130, %126, %cst_63 {dimension_numbers = #tpu.dot_dimension_numbers<[1], [0], [0], [1], [0, 0, 1, 1], [], []>} : vector<9x8xf32>, vector<8x10xf32>, vector<9x10xf32> -> vector<9x10xf32>
    %132 = vector.extract_strided_slice %124 {offsets = [1, 0, 0], sizes = [1, 9, 8], strides = [1, 1, 1]} : vector<2x9x8xf32> to vector<1x9x8xf32>
    %133 = vector.shape_cast %132 : vector<1x9x8xf32> to vector<9x8xf32>
    %cst_64 = arith.constant dense<0.000000e+00> : vector<9x10xf32>
    %134 = tpu.matmul %133, %126, %cst_64 {dimension_numbers = #tpu.dot_dimension_numbers<[1], [0], [0], [1], [0, 0, 1, 1], [], []>} : vector<9x8xf32>, vector<8x10xf32>, vector<9x10xf32> -> vector<9x10xf32>
    %135 = vector.shape_cast %131 : vector<9x10xf32> to vector<1x9x10xf32>
    %136 = vector.shape_cast %134 : vector<9x10xf32> to vector<1x9x10xf32>
    %137 = tpu.concatenate %135, %136 in 0 : vector<1x9x10xf32>, vector<1x9x10xf32> -> vector<2x9x10xf32>
    %138 = vector.shape_cast %128 : vector<1x10xf32> to vector<1x1x10xf32>
    %139 = vector.broadcast %138 : vector<1x1x10xf32> to vector<2x9x10xf32>
    %140 = arith.addf %137, %139 : vector<2x9x10xf32>
    %141 = vector.extract_strided_slice %140 {offsets = [0, 0, 0], sizes = [2, 9, 5], strides = [1, 1, 1]} : vector<2x9x10xf32> to vector<2x9x5xf32>
    %142 = vector.extract_strided_slice %140 {offsets = [0, 0, 5], sizes = [2, 9, 5], strides = [1, 1, 1]} : vector<2x9x10xf32> to vector<2x9x5xf32>
    %143 = arith.negf %141 : vector<2x9x5xf32>
    %144 = math.exp %143 : vector<2x9x5xf32>
    %cst_65 = arith.constant 1.000000e+00 : f32
    %145 = vector.broadcast %cst_65 : f32 to vector<2x9x5xf32>
    %146 = arith.addf %145, %144 : vector<2x9x5xf32>
    %147 = arith.divf %145, %146 : vector<2x9x5xf32>
    %148 = vector.shape_cast %32 : vector<9x5xf32> to vector<1x9x5xf32>
    %cst_66 = arith.constant 1.000000e+00 : f32
    %149 = vector.broadcast %cst_66 : f32 to vector<1x9x5xf32>
    %150 = arith.subf %149, %148 : vector<1x9x5xf32>
    %151 = arith.addf %25, %142 : vector<2x9x5xf32>
    %152 = vector.broadcast %150 : vector<1x9x5xf32> to vector<2x9x5xf32>
    %153 = arith.mulf %152, %151 : vector<2x9x5xf32>
    %154 = arith.mulf %153, %147 : vector<2x9x5xf32>
    %155 = arith.addf %35, %154 : vector<2x9x5xf32>
    %cst_67 = arith.constant 0.000000e+00 : f32
    %156 = vector.broadcast %cst_67 : f32 to vector<2x9x5xf32>
    %157 = arith.minimumf %141, %156 : vector<2x9x5xf32>
    %158 = math.absf %141 : vector<2x9x5xf32>
    %cst_68 = arith.constant 0.000000e+00 : f32
    %159 = vector.broadcast %cst_68 : f32 to vector<2x9x5xf32>
    %160 = arith.subf %159, %158 : vector<2x9x5xf32>
    %161 = math.exp %160 : vector<2x9x5xf32>
    %cst_69 = arith.constant 1.000000e+00 : f32
    %162 = vector.broadcast %cst_69 : f32 to vector<2x9x5xf32>
    %163 = arith.addf %162, %161 : vector<2x9x5xf32>
    %164 = math.log %163 : vector<2x9x5xf32>
    %165 = arith.subf %157, %164 : vector<2x9x5xf32>
    %cst_70 = arith.constant dense<0.000000e+00> : vector<2x9xf32>
    %166 = vector.multi_reduction <add>, %165, %cst_70 [2] : vector<2x9x5xf32> to vector<2x9xf32>
    %cst_71 = arith.constant dense<0.000000e+00> : vector<2xf32>
    %167 = vector.multi_reduction <add>, %166, %cst_71 [1] : vector<2x9xf32> to vector<2xf32>
    %168 = vector.shape_cast %167 : vector<2xf32> to vector<2x1xf32>
    %c0_72 = arith.constant 0 : index
    %c0_73 = arith.constant 0 : index
    %169 = vector.load %arg5[%c0_72, %c0_73] : memref<2x128xf32, #tpu.memory_space<vmem>>, vector<2x128xf32>
    %170 = vector.broadcast %30 : vector<1x1xf32> to vector<2x128xf32>
    %171 = arith.addf %169, %170 : vector<2x128xf32>
    %172 = vector.broadcast %168 : vector<2x1xf32> to vector<2x128xf32>
    %173 = arith.addf %171, %172 : vector<2x128xf32>
    %c0_74 = arith.constant 0 : index
    %c0_75 = arith.constant 0 : index
    %174 = vector.load %arg5[%c0_74, %c0_75] : memref<2x128xf32, #tpu.memory_space<vmem>>, vector<2x128xf32>
    tpu.vector_store %arg5[%c0_74, %c0_75], %173 {strides = array<i32>} : memref<2x128xf32, #tpu.memory_space<vmem>>, vector<2x128xf32>,
    %c0_76 = arith.constant 0 : index
    %c0_77 = arith.constant 0 : index
    %c0_78 = arith.constant 0 : index
    %175 = vector.load %arg4[%c0_76, %c0_77, %c0_78] : memref<2x9x5xf32, #tpu.memory_space<vmem>>, vector<2x9x5xf32>
    tpu.vector_store %arg4[%c0_76, %c0_77, %c0_78], %155 {strides = array<i32>} : memref<2x9x5xf32, #tpu.memory_space<vmem>>, vector<2x9x5xf32>,
    return
  }
  func.func @transform_0(%arg0: i32) -> (i32, i32, i32) {
    %c0_i32 = arith.constant 0 : i32
    %c0_i32_0 = arith.constant 0 : i32
    %c0_i32_1 = arith.constant 0 : i32
    %c0_i32_2 = arith.constant 0 : i32
    return %c0_i32, %c0_i32_0, %c0_i32_1 : i32, i32, i32
  }
  func.func @transform_1(%arg0: i32) -> (i32, i32, i32) {
    %c0_i32 = arith.constant 0 : i32
    %c0_i32_0 = arith.constant 0 : i32
    %c0_i32_1 = arith.constant 0 : i32
    %c0_i32_2 = arith.constant 0 : i32
    return %c0_i32, %c0_i32_0, %c0_i32_1 : i32, i32, i32
  }
  func.func @transform_2(%arg0: i32) -> (i32, i32, i32) {
    %c0_i32 = arith.constant 0 : i32
    %c0_i32_0 = arith.constant 0 : i32
    %c0_i32_1 = arith.constant 0 : i32
    return %arg0, %c0_i32, %c0_i32_0 : i32, i32, i32
  }
  func.func @transform_3(%arg0: i32) -> (i32, i32, i32) {
    %c0_i32 = arith.constant 0 : i32
    %c0_i32_0 = arith.constant 0 : i32
    %c0_i32_1 = arith.constant 0 : i32
    %c0_i32_2 = arith.constant 0 : i32
    return %c0_i32, %c0_i32_0, %c0_i32_1 : i32, i32, i32
  }
  func.func @transform_4(%arg0: i32) -> (i32, i32) {
    %c0_i32 = arith.constant 0 : i32
    %c0_i32_0 = arith.constant 0 : i32
    %c0_i32_1 = arith.constant 0 : i32
    return %c0_i32, %c0_i32_0 : i32, i32
  }
}

</mosaic_0001>

<bundles_post_ra>
// kernel: tpu_custom_call.1
= control target key start
LH: loop header
LB: loop body
LE: loop exit
PB: predicated region body
PF: predicated region fallthrough
CT: control target
= control target key end

     0   :  { %10 = vsyncpa [#allocation4], 0  ;;  %s2138_s0 = inlined_call_operand.vmem [shape: f32[2,9,5], index: 0, kind: input, shape index: {}]   ;;  %s2139_s1 = inlined_call_operand.vmem [shape: f32[2,9,36], index: 1, kind: input, shape index: {}]   ;;  %s2140_s2 = inlined_call_operand.hbm [shape: f32[4,72,128], index: 2, kind: input, shape index: {}]   ;;  %s2141_s3 = inlined_call_operand.vmem [shape: f32[2,9,5], index: 3, kind: output, shape index: {0}]   ;;  %s2142_s4 = inlined_call_operand.hbm [shape: f32[2,128], index: 4, kind: output, shape index: {1}]  }
   0x1   :  { %12 = vsyncpa [#allocation4 + $0x1], 0 }
   0x2   :  { %13 = vsyncpa [#allocation5], 0  ;;  %s1787_s15 = smov 0   ;;  %s1789_s16 = smov 0  }
   0x3   :  { %s1791_s17 = smov 0   ;;  %s1793_s18 = smov 0  }
   0x4 LB: > { %s1806_s19 = sadd.s32 4294967295, %s1750_s18   ;;  %s1809_s20 = sadd.s32 1, %s1750_s18   ;;  %s1750_s18 = sphi %s1793_s18, %s2151_s18   ;;  %s1746_s17 = sphi %s1791_s17, %s2150_s17   ;;  %s1742_s16 = sphi %s1789_s16, %s2149_s16   ;;  %s1738_s15 = sphi %s1787_s15, %s2148_s15  }
   0x5   : > { %s65_s21 = ssub.s32 %s1750_s18, %s1809_s20  ;;  %s68_s22 = sadd.s32 1, %s1746_s17 }
   0x6   : > { %p66_p0 = scmp.eq.s32.totalorder %s65_s21, 0  ;;  %p75_p1 = scmp.ne.s32.totalorder %s1746_s17, %s1742_s16 }
   0x7   : > { %p76_p2 = scmp.eq.s32.totalorder %s1750_s18, 0  ;;  %p81_p3 = scmp.ne.s32.totalorder %s1742_s16, %s1738_s15 }
   0x8   : > { %s1819_s23 = scalar_select %p66_p0, %s1746_s17, %s68_s22  }
   0x9   : > { %p77_p4 = por %p76_p2, %p75_p1  ;;  %p82_p5 = scmp.eq.s32.totalorder %s1806_s19, 0 }
   0xa   : > { %p1564_p6 = scmp.lt.s32.totalorder %s1750_s18, 4  ;;  %s153_s25 = sand.u32 1, %s1746_s17  }
   0xb   : > { %p1823_p7 = por %p82_p5, %p81_p3  ;;  %s1551_s26 = smul.u32 72, %s153_s25 }
   0xc   : > { %s1552_s27 = smul.u32 1152, %s1750_s18  ;;  %p1829_p8 = pnand %p1564_p6, %p77_p4 }
   0xd   : > { %s2144_s24 = scalar_select %p1823_p7, 1, 0 }
   0xe   : > { %s1836_s5 = scalar_lea.hbm %s2140_s2, %s1552_s27  ;;  %s157_s6 = scalar_lea.vmem [#allocation3], %s1551_s26 }
   0xf   : > { %s164_s7 = sshll.u32 %s157_s6, 4  ;;  %s1841_s8 = scalar_lea.sflag [#allocation4], %s153_s25  ;;  %s1838_s7 = int_to_ptr.vmem [resolvable:$true] %s164_s7 }
  0x10   : > { %s1660_s9 = scalar_lea.hbm %s1836_s5, 1152  ;;  %p1662_p11 = pneg %p1829_p8 }
  0x11   : > { %p1661_p10 = scmp.ne.s32.totalorder %s1836_s5, %s1660_s9  ;;  %s1665_s12 = scalar_lea.hbm %s2140_s2, 4608 }
  0x12   : > { %p1666_p0 = scmp.lt.s32.totalorder %s1836_s5, %s2140_s2  ;;  %p1667_p1 = scmp.lt.s32.totalorder %s1665_s12, %s1660_s9 }
  0x13   : > { %p1663_p12 = pnand %p1662_p11, %p1661_p10 }
  0x14   : > { %p1668_p2 = por %p1667_p1, %p1666_p0 }
  0x15   : > { %p1664_p13 = pneg %p1663_p12 }
  0x17   : > { %p1669_p3 = pnand %p1668_p2, %p1664_p13 }
  0x19   : > { %1672 = shalt.err (!%p1669_p3)
}
  0x1a   : > { %s1673_s15 = scalar_lea.vmem %s1838_s7, 1152  ;;  %s1752_s21 = smov [#allocation3]  }
  0x1b   : > { %p1674_p4 = scmp.ne.s32.totalorder %s1838_s7, %s1673_s15  ;;  %s1678_s22 = sshll.u32 %s1752_s21, 4  ;;  %s1679_s22 = int_to_ptr.vmem [resolvable:$false] %s1678_s22 }
  0x1c   : > { %s1680_s25 = scalar_lea.vmem %s1679_s22, 2304  ;;  %p1681_p10 = scmp.lt.s32.totalorder %s1838_s7, %s1679_s22 }
  0x1d   : > { %p1676_p5 = pnand %p1674_p4, %p1662_p11  ;;  %p1682_p12 = scmp.lt.s32.totalorder %s1680_s25, %s1673_s15 }
  0x1f   : > { %p1677_p6 = pneg %p1676_p5  ;;  %p1683_p9 = por %p1682_p12, %p1681_p10 }
  0x21   : > { %p1684_p7 = pnand %p1683_p9, %p1677_p6 }
  0x23   : > { %1687 = shalt.err (!%p1684_p7)
}
  0x24   : > { %s1753_s26 = smov 128   ;;  %s1754_s27 = smov 8  }
  0x25   : > { %1563 = dma.hbm_to_vmem [thread:$0]  (!%p1829_p8), %s1836_s5, 1152, %s1838_s7, %s1841_s8, %s1753_s26, %s1753_s26, %s1754_s27  }
  0x26   : > { %p172_p11 = scmp.lt.s32.totalorder %s1750_s18, 5  ;;  %p2146_p13 = scmp.ge.s32.totalorder %s1750_s18, 1 }
  0x28   : > { %p173_p0 = pnand %p2146_p13, %p172_p11 }
  0x29   : > { %s178_s29 = sand.u32 (!%p173_p0), 1, %s1742_s16   ;;  %p2147_p7 = scmp.ne.s32.totalorder (!%p173_p0), %s2144_s24, 0 }
  0x2a   : > { %176 = sbr.rel (%p173_p0) target bundleno = 2321 (0x911), region = 32  ;;  %s179_s6 = scalar_lea.sflag (!%p173_p0), [#allocation4], %s178_s29 }
  0x2b   : > { %s1553_s30 = smul.u32 (!%p173_p0), 72, %s178_s29 }
  0x2d   : > { %s1866_s9 = scalar_lea.vmem (!%p173_p0), [#allocation3], %s1553_s30 }
  0x2f   : > { %1729 = dma.done.wait (%p2147_p7), %s179_s6, 1152  }
  0x30   : > { %1731 = vsyncadd (%p2147_p7), %s179_s6, 4294966144  ;;  %p1425_p9 = scmp.ne.s32.totalorder %s1806_s19, 0 }
  0x32   : > { %205 = sbr.rel (%p1425_p9) target bundleno = 59 (0x3b), region = 40 }
  0x37   : > { %v206_v0 = vld [vmem:[%s2138_s0] sm:$0xff]  ;;  %vm210_vm0 = vcmask 39936   ;;  %v207_v1 = vld [vmem:[%s2138_s0 + $0x8] sm:$0x1]  ;;  %vm212_vm1 = vcmask 32768   ;;  %v208_v2 = vld [vmem:[%s2138_s0 + $0x10] sm:$0xff] }
  0x38   : > { %211 = vst.msk [vmem:[%s2141_s3] sm:$0xff] %vm210_vm0, %v206_v0  ;;  %214 = vst.msk [vmem:[%s2141_s3 + $0x10] sm:$0xff] %vm210_vm0, %v208_v2  ;;  %v209_v3 = vld [vmem:[%s2138_s0 + $0x18] sm:$0x1]  ;;  %v1755_v4 = vmov 0.0  }
  0x39   : > { %213 = vst.msk [vmem:[%s2141_s3 + $0x8] sm:$0x1] %vm212_vm1, %v207_v1  ;;  %215 = vst.msk [vmem:[%s2141_s3 + $0x18] sm:$0x1] %vm212_vm1, %v209_v3 }
  0x3a   : > { %216 = vst [vmem:[#allocation6] sm:$0x3] %v1755_v4 }
  0x3b PF: > { %vm225_vm2 = vcmask 32768   ;;  %vm221_vm3 = vcmask 39936   ;;  %vm236_vm4 = vcmask 1040384   ;;  %v319_v35 = vld [vmem:[%s1866_s9 + $0x10] sm:$0x1f]  ;;  %vm327_vm5 = vcmask 1044480  }
  0x3c   : > { %1491 = vmatprep.subr.msk.mxu0 %vm327_vm5, %v319_v35  ;;  %1496 = vmatprep.subr.msk.mxu1 %vm327_vm5, %v319_v35  ;;  %v1923_v59 = vld [vmem:[%s1866_s9] sm:$0xff]  ;;  %v1938_v2 = vld [vmem:[%s1866_s9 + $0x8] sm:$0x1]  ;;  %s1756_s8 = smov 112   ;;  %s1757_s10 = smov 64   ;;  %vm575_vm10 = vcmask 293888  }
  0x3d   : > { %1492 = vmatpush3.msk.msra.mxu0 %vm327_vm5, %v319_v35  ;;  %1497 = vmatpush3.msk.msra.mxu1 %vm327_vm5, %v319_v35  ;;  %s1758_s11 = smov 80   ;;  %s1759_s24 = smov 96   ;;  %vm513_vm11 = vcmask 122880   ;;  %vm511_vm12 = vcmask 130048   ;;  %vm582_vm13 = vcmask 1043456   ;;  %vm983_vm14 = vcmask 57344  }
  0x3e   : > { %vm979_vm15 = vcmask 64512   ;;  %vm1331_vm0 = vcmask 130112   ;;  %vm1342_vm1 = vcmask 1041409   ;;  %s1761_s18 = smov [#allocation6]   ;;  %p1565_p8 = scmp.eq.s32.totalorder %s1806_s19, 3 }
  0x3f   : > { %v217_v6 = vld [vmem:[%s2141_s3] sm:$0xff]  ;;  %v219_v7 = vld [vmem:[%s2141_s3 + $0x10] sm:$0xff]  ;;  %s1367_s7 = sshll.u32 %s1761_s18, 4  ;;  %s1368_s7 = int_to_ptr.vmem [resolvable:$true] %s1367_s7 }
  0x40   : > { %v218_v5 = vld [vmem:[%s2141_s3 + $0x8] sm:$0x1]  ;;  %v222_v9 = vsel %vm221_vm3, %v217_v6, 0.0  ;;  %v220_v10 = vld [vmem:[%s2141_s3 + $0x18] sm:$0x1]  ;;  %v229_v12 = vsel %vm221_vm3, %v219_v7, 0.0  ;;  %p1695_p4 = scmp.lt.s32.totalorder %s1368_s7, %s1368_s7 }
  0x41   : > { %v226_v8 = vsel %vm225_vm2, %v218_v5, 0.0  ;;  %223 = vadd.xlane.f32.xlu1 %v222_v9  ;;  %v232_v11 = vsel %vm225_vm2, %v220_v10, 0.0 }
  0x42   : > { %227 = vadd.xlane.f32.xlu0 %v226_v8 }
  0x45   : > { %230 = vadd.xlane.f32.xlu1 %v229_v12 }
  0x46   : > { %233 = vadd.xlane.f32.xlu0 %v232_v11 }
  0xca   : > { %v224_v14 = vpop.xlane.xlu1 %223 }
  0xcb   : > { %v228_v13 = vpop.xlane.xlu0 %227 }
  0xcc   : > { %v237_v17 = vsel %vm236_vm4, %v228_v13, 0.0 }
  0xce   : > { %v231_v16 = vpop.xlane.xlu1 %230 }
  0xcf   : > { %v234_v15 = vpop.xlane.xlu0 %233  ;;  %v235_v19 = vadd.f32 %v231_v16, %v224_v14  ;;  %v1432_v14 = vld [vmem:[%s1866_s9 + $0x18] ss:$0 sm:$0xff] }
  0xd0   : > { %v238_v18 = vsel %vm236_vm4, %v234_v15, 0.0 }
  0xd1   : > { %v239_v20 = vadd.f32 %v238_v18, %v237_v17  ;;  %v241_v21 = vmul.f32 0.1, %v235_v19 }
  0xd3   : > { %v242_v22 = vmul.f32 0.1, %v239_v20  ;;  %v243_v23 = vsub.f32 %v217_v6, %v241_v21  ;;  %v245_v24 = vsub.f32 %v219_v7, %v241_v21 }
  0xd5   : > { %v244_v25 = vsub.f32 %v218_v5, %v242_v22  ;;  %v246_v26 = vsub.f32 %v220_v10, %v242_v22  ;;  %v247_v27 = vmul.f32 %v243_v23, %v243_v23  ;;  %v249_v30 = vmul.f32 %v245_v24, %v245_v24 }
  0xd7   : > { %v248_v28 = vmul.f32 %v244_v25, %v244_v25  ;;  %v251_v29 = vsel %vm221_vm3, %v247_v27, 0.0  ;;  %v250_v32 = vmul.f32 %v246_v26, %v246_v26  ;;  %v257_v33 = vsel %vm221_vm3, %v249_v30, 0.0 }
  0xd8   : > { %252 = vadd.xlane.f32.xlu0 %v251_v29 }
  0xd9   : > { %v254_v31 = vsel %vm225_vm2, %v248_v28, 0.0  ;;  %v260_v34 = vsel %vm225_vm2, %v250_v32, 0.0 }
  0xda   : > { %255 = vadd.xlane.f32.xlu1 %v254_v31 }
  0xdc   : > { %258 = vadd.xlane.f32.xlu0 %v257_v33 }
  0xde   : > { %261 = vadd.xlane.f32.xlu1 %v260_v34 }
 0x161   : > { %v253_v36 = vpop.xlane.xlu0 %252 }
 0x163   : > { %v256_v37 = vpop.xlane.xlu1 %255 }
 0x164   : > { %v264_v41 = vsel %vm236_vm4, %v256_v37, 0.0 }
 0x165   : > { %v259_v38 = vpop.xlane.xlu0 %258 }
 0x166   : > { %v263_v39 = vadd.f32 %v259_v38, %v253_v36 }
 0x167   : > { %v262_v40 = vpop.xlane.xlu1 %261 }
 0x168   : > { %v265_v42 = vsel %vm236_vm4, %v262_v40, 0.0  ;;  %v268_v43 = vmul.f32 0.11111111, %v263_v39 }
 0x169   : > { %v266_v44 = vadd.f32 %v265_v42, %v264_v41 }
 0x16a   : > { %1608 = vrsqrt.f32 %v268_v43  ;;  %vm272_vm6 = vcmp.eq.f32.partialorder %v268_v43, inf  ;;  %v275_v48 = vand.u32 2147483648, %v268_v43  ;;  %vm274_vm7 = vcmp.eq.f32.partialorder %v268_v43, 0.0 }
 0x16b   : > { %v269_v45 = vmul.f32 0.11111111, %v266_v44 }
 0x16d   : > { %1610 = vrsqrt.f32 %v269_v45  ;;  %vm279_vm8 = vcmp.eq.f32.partialorder %v269_v45, inf  ;;  %v282_v54 = vand.u32 2147483648, %v269_v45  ;;  %vm281_vm9 = vcmp.eq.f32.partialorder %v269_v45, 0.0 }
 0x177   : > { %v1609_v46 = vpop.eup %1608 }
 0x178   : > { %v271_v47 = vmul.f32 %v1609_v46, %v268_v43 }
 0x17a   : > { %v1611_v49 = vpop.eup %1610  ;;  %v273_v50 = vsel %vm272_vm6, %v268_v43, %v271_v47  ;;  %v316_v47 = vld [vmem:[%s2139_s1 + $0x8] sm:$0x1] }
 0x17b   : > { %v276_v51 = vsel %vm274_vm7, %v275_v48, %v273_v50  ;;  %v278_v52 = vmul.f32 %v1611_v49, %v269_v45 }
 0x17c   : > { %v284_v53 = vadd.f32 1e-06, %v276_v51 }
 0x17d   : > { %v280_v55 = vsel %vm279_vm8, %v269_v45, %v278_v52  ;;  %v318_v52 = vld [vmem:[%s2139_s1 + $0x18] sm:$0x1] }
 0x17e   : > { %1612 = vrcp.f32 %v284_v53  ;;  %v283_v56 = vsel %vm281_vm9, %v282_v54, %v280_v55 }
 0x17f   : > { %v285_v57 = vadd.f32 1e-06, %v283_v56 }
 0x181   : > { %1614 = vrcp.f32 %v285_v57 }
 0x18b   : > { %v1613_v58 = vpop.eup %1612 }
 0x18c   : > { %v1925_v60 = vmul.f32 %v1613_v58, %v243_v23  ;;  %v1927_v61 = vmul.f32 %v1613_v58, %v245_v24  ;;  %v294_v62 = vand.u32 2147483647, %v1613_v58  ;;  %v315_v23 = vld [vmem:[%s2139_s1] sm:$0xff]  ;;  %v317_v24 = vld [vmem:[%s2139_s1 + $0x10] sm:$0xff] }
 0x18e   : > { %v1615_v63 = vpop.eup %1614  ;;  %v1931_v0 = vmul.f32 %v1923_v59, %v1925_v60  ;;  %v1935_v1 = vmul.f32 %v1923_v59, %v1927_v61  ;;  %1616 = vlog2.f32 %v294_v62 }
 0x18f   : > { %v1940_v3 = vmul.f32 %v1615_v63, %v244_v25  ;;  %v1942_v4 = vmul.f32 %v1615_v63, %v246_v26  ;;  %v295_v5 = vand.u32 2147483647, %v1615_v63 }
 0x190   : > { %1493 = vmatprep.mubr.msk.f32.mxu0 %vm221_vm3, %v1931_v0  ;;  %1498 = vmatprep.mubr.msk.f32.mxu1 %vm221_vm3, %v1935_v1 }
 0x191   : > { %v1950_v6 = vmul.f32 %v1938_v2, %v1940_v3  ;;  %v1954_v7 = vmul.f32 %v1938_v2, %v1942_v4  ;;  %1618 = vlog2.f32 %v295_v5 }
 0x193   : > { %1494 = vmatmul.mubr.msk.f32.vlgmr.msra.gmra.mxu0 %vm221_vm3, %v1950_v6  ;;  %1499 = vmatmul.mubr.msk.f32.vlgmr.msra.gmra.mxu1 %vm221_vm3, %v1954_v7 }
 0x194   : > { %1511 = vmatprep.mubr.msk.f32.mxu0 %vm575_vm10, %v315_v23  ;;  %1524 = vmatprep.mubr.msk.f32.mxu1 %vm575_vm10, %v317_v24 }
 0x19b   : > { %v1617_v8 = vpop.eup %1616 }
 0x19c   : > { %v297_v11 = vmul.f32 0.6931472, %v1617_v8 }
 0x19e   : > { %v1619_v9 = vpop.eup %1618 }
 0x19f   : > { %v299_v10 = vmul.f32 0.6931472, %v1619_v9 }
 0x1a1   : > { %v300_v12 = vsel %vm236_vm4, %v299_v10, 0.0 }
 0x1a2   : > { %v1961_v13 = vadd.f32 %v300_v12, %v297_v11 }
 0x253   : > { %v1495_v15 = vpop.f32.mrf.mxu0  ;;  %v1500_v17 = vpop.f32.mrf.mxu1 }
 0x254   : > { %v1964_v16 = vadd.f32 %v1495_v15, %v1432_v14  ;;  %v1968_v19 = vadd.f32 %v1500_v17, %v1432_v14 }
 0x255   : > { %v397_v18 = vpop.f32.mrf.mxu0  ;;  %v478_v21 = vpop.f32.mrf.mxu1 }
 0x256   : > { %501 = vrot.lane.b32.xlu0 %v1964_v16, %s1756_s8  ;;  %551 = vrot.lane.b32.xlu1 %v1964_v16, %s1757_s10  ;;  %v1970_v20 = vadd.f32 %v1432_v14, %v397_v18  ;;  %v1976_v22 = vadd.f32 %v1432_v14, %v478_v21 }
 0x25a   : > { %555 = vrot.lane.b32.xlu1 %v1968_v19, %s1757_s10  ;;  %549 = vrot.lane.b32.xlu0 %v1970_v20, %s1757_s10 }
 0x25e   : > { %535 = vrot.lane.b32.xlu1 %v1964_v16, %s1758_s11  ;;  %533 = vrot.lane.b32.xlu0 %v1970_v20, %s1758_s11 }
 0x262   : > { %539 = vrot.lane.b32.xlu1 %v1968_v19, %s1758_s11  ;;  %537 = vrot.lane.b32.xlu0 %v1976_v22, %s1758_s11 }
 0x266   : > { %519 = vrot.lane.b32.xlu1 %v1964_v16, %s1759_s24  ;;  %517 = vrot.lane.b32.xlu0 %v1970_v20, %s1759_s24 }
 0x26a   : > { %523 = vrot.lane.b32.xlu1 %v1968_v19, %s1759_s24  ;;  %521 = vrot.lane.b32.xlu0 %v1976_v22, %s1759_s24 }
 0x26e   : > { %553 = vrot.lane.b32.xlu1 %v1976_v22, %s1757_s10  ;;  %499 = vrot.lane.b32.xlu0 %v1970_v20, %s1756_s8 }
 0x272   : > { %505 = vrot.lane.b32.xlu1 %v1968_v19, %s1756_s8 }
 0x276   : > { %503 = vrot.lane.b32.xlu1 %v1976_v22, %s1756_s8  ;;  %s1688_s8 = scalar_lea.vmem %s1368_s7, 32 }
 0x277   : > { %p1689_p1 = scmp.ne.s32.totalorder %s1368_s7, %s1688_s8  ;;  %p1696_p5 = scmp.lt.s32.totalorder %s1688_s8, %s1688_s8 }
 0x279   : > { %p1690_p2 = pnand %p1689_p1, %p1565_p8  ;;  %p1697_p6 = por %p1696_p5, %p1695_p4 }
 0x27b   : > { %p1691_p3 = pneg %p1690_p2 }
 0x27d   : > { %p1698_p10 = pnand %p1697_p6, %p1691_p3 }
 0x2c8   : > { %v502_v25 = vpop.permute.xlu0 %501  ;;  %v552_v26 = vpop.permute.xlu1 %551 }
 0x2c9   : > { %514 = vst.msk [vmem:[#allocation2 + $0x8] sm:$0x1] %vm513_vm11, %v502_v25  ;;  %562 = vst.msk [vmem:[#allocation2 + $0x23] sm:$0x1] %vm513_vm11, %v552_v26 }
 0x2cc   : > { %v556_v27 = vpop.permute.xlu1 %555  ;;  %v550_v28 = vpop.permute.xlu0 %549 }
 0x2cd   : > { %564 = vst.msk [vmem:[#allocation2 + $0x4b] sm:$0x1] %vm513_vm11, %v556_v27 }
 0x2ce   : > { %561 = vst.msk [vmem:[#allocation2 + $0x1b] sm:$0xff] %vm511_vm12, %v550_v28 }
 0x2d0   : > { %v536_v29 = vpop.permute.xlu1 %535  ;;  %v534_v30 = vpop.permute.xlu0 %533 }
 0x2d1   : > { %546 = vst.msk [vmem:[#allocation2 + $0x1a] sm:$0x1] %vm513_vm11, %v536_v29 }
 0x2d2   : > { %545 = vst.msk [vmem:[#allocation2 + $0x12] sm:$0xff] %vm511_vm12, %v534_v30 }
 0x2d4   : > { %v540_v31 = vpop.permute.xlu1 %539  ;;  %v538_v32 = vpop.permute.xlu0 %537 }
 0x2d5   : > { %v569_v33 = vld [vmem:[#allocation2 + $0x20] sm:$0xf]  ;;  %548 = vst.msk [vmem:[#allocation2 + $0x42] sm:$0x1] %vm513_vm11, %v540_v31 }
 0x2d6   : > { %547 = vst.msk [vmem:[#allocation2 + $0x3a] sm:$0xff] %vm511_vm12, %v538_v32  ;;  %1501 = vmatprep.subr.msk.mxu0 %vm582_vm13, %v569_v33 }
 0x2d7   : > { %1502 = vmatpush3.msk.msra.mxu0 %vm582_vm13, %v569_v33 }
 0x2d8   : > { %v520_v34 = vpop.permute.xlu1 %519  ;;  %v518_v35 = vpop.permute.xlu0 %517 }
 0x2d9   : > { %v568_v36 = vld [vmem:[#allocation2 + $0x18] sm:$0xff]  ;;  %530 = vst.msk [vmem:[#allocation2 + $0x11] sm:$0x1] %vm513_vm11, %v520_v34 }
 0x2da   : > { %529 = vst.msk [vmem:[#allocation2 + $0x9] sm:$0xff] %vm511_vm12, %v518_v35  ;;  %1503 = vmatprep.subr.mxu0 %v568_v36  ;;  %v807_v34 = vld [vmem:[%s1866_s9 + $0x28] sm:$0xff]  ;;  %v806_v35 = vld [vmem:[%s1866_s9 + $0x20] sm:$0xff] }
 0x2db   : > { %1504 = vmatpush3.msra.mxu0 %v568_v36 }
 0x2dc   : > { %v524_v37 = vpop.permute.xlu1 %523  ;;  %v522_v38 = vpop.permute.xlu0 %521 }
 0x2dd   : > { %532 = vst.msk [vmem:[#allocation2 + $0x39] sm:$0x1] %vm513_vm11, %v524_v37 }
 0x2de   : > { %531 = vst.msk [vmem:[#allocation2 + $0x31] sm:$0xff] %vm511_vm12, %v522_v38 }
 0x2e0   : > { %v554_v39 = vpop.permute.xlu1 %553  ;;  %v500_v40 = vpop.permute.xlu0 %499 }
 0x2e1   : > { %v567_v41 = vld [vmem:[#allocation2 + $0x10] sm:$0xff]  ;;  %563 = vst.msk [vmem:[#allocation2 + $0x43] sm:$0xff] %vm511_vm12, %v554_v39  ;;  %512 = vst.msk [vmem:[#allocation2] sm:$0xff] %vm511_vm12, %v500_v40  ;;  %v566_v42 = vld [vmem:[#allocation2 + $0x8] sm:$0xff] }
 0x2e2   : > { %1505 = vmatprep.subr.mxu0 %v567_v41 }
 0x2e3   : > { %1506 = vmatpush3.msra.mxu0 %v567_v41 }
 0x2e4   : > { %1507 = vmatprep.subr.mxu0 %v566_v42  ;;  %v506_v43 = vpop.permute.xlu1 %505 }
 0x2e5   : > { %1508 = vmatpush3.msra.mxu0 %v566_v42  ;;  %516 = vst.msk [vmem:[#allocation2 + $0x30] sm:$0x1] %vm513_vm11, %v506_v43  ;;  %v572_v49 = vld [vmem:[#allocation2 + $0x38] sm:$0xff] }
 0x2e8   : > { %v504_v44 = vpop.permute.xlu1 %503  ;;  %v565_v45 = vld [vmem:[#allocation2] sm:$0xff]  ;;  %v574_v46 = vld [vmem:[#allocation2 + $0x48] sm:$0xf] }
 0x2e9   : > { %515 = vst.msk [vmem:[#allocation2 + $0x28] sm:$0xff] %vm511_vm12, %v504_v44  ;;  %1509 = vmatprep.subr.mxu0 %v565_v45  ;;  %1514 = vmatprep.subr.msk.mxu1 %vm582_vm13, %v574_v46  ;;  %v573_v48 = vld [vmem:[#allocation2 + $0x40] sm:$0xff] }
 0x2ea   : > { %1510 = vmatpush3.msra.mxu0 %v565_v45  ;;  %1515 = vmatpush3.msk.msra.mxu1 %vm582_vm13, %v574_v46 }
 0x2eb   : > { %1512 = vmatmul.mubr.msk.f32.vlgmr.msra.gmra.mxu0 %vm575_vm10, %v316_v47  ;;  %1516 = vmatprep.subr.mxu1 %v573_v48 }
 0x2ec   : > { %1517 = vmatpush3.msra.mxu1 %v573_v48  ;;  %v571_v50 = vld [vmem:[#allocation2 + $0x30] sm:$0xff]  ;;  %1527 = vmatprep.subr.mxu0 %v807_v34 }
 0x2ed   : > { %1518 = vmatprep.subr.mxu1 %v572_v49  ;;  %1528 = vmatpush3.msra.mxu0 %v807_v34 }
 0x2ee   : > { %1519 = vmatpush3.msra.mxu1 %v572_v49  ;;  %1529 = vmatprep.subr.mxu0 %v806_v35 }
 0x2ef   : > { %1520 = vmatprep.subr.mxu1 %v571_v50  ;;  %1530 = vmatpush3.msra.mxu0 %v806_v35 }
 0x2f0   : > { %1521 = vmatpush3.msra.mxu1 %v571_v50  ;;  %v570_v51 = vld [vmem:[#allocation2 + $0x28] sm:$0xff] }
 0x2f1   : > { %1522 = vmatprep.subr.mxu1 %v570_v51 }
 0x2f2   : > { %1523 = vmatpush3.msra.mxu1 %v570_v51 }
 0x2f3   : > { %1525 = vmatmul.mubr.msk.f32.vlgmr.msra.gmra.mxu1 %vm575_vm10, %v318_v52  ;;  %1534 = vmatprep.subr.mxu1 %v807_v34 }
 0x2f4   : > { %1535 = vmatpush3.msra.mxu1 %v807_v34 }
 0x2f5   : > { %1536 = vmatprep.subr.mxu1 %v806_v35 }
 0x2f6   : > { %1537 = vmatpush3.msra.mxu1 %v806_v35 }
 0x3ab   : > { %v1513_v53 = vpop.f32.mrf.mxu0 }
 0x3ac   : > { %v746_v54 = vadd.f32 %v1513_v53, %v1964_v16 }
 0x3ad   : > { %v652_v55 = vpop.f32.mrf.mxu0 }
 0x3ae   : > { %v745_v56 = vadd.f32 %v652_v55, %v1970_v20  ;;  %v752_v57 = vsel %vm513_vm11, %v746_v54, 0.0 }
 0x3af   : > { %753 = vadd.xlane.f32.xlu0 %v752_v57 }
 0x3b0   : > { %v749_v58 = vsel %vm511_vm12, %v745_v56, 0.0 }
 0x3b3   : > { %v1526_v62 = vpop.f32.mrf.mxu1  ;;  %750 = vadd.xlane.f32.xlu0 %v749_v58  ;;  %v1443_v58 = vld [vmem:[%s1866_s9 + $0x30] ss:$0 sm:$0xff] }
 0x3b4   : > { %v748_v63 = vadd.f32 %v1526_v62, %v1968_v19 }
 0x3b5   : > { %v736_v5 = vpop.f32.mrf.mxu1 }
 0x3b6   : > { %v747_v8 = vadd.f32 %v736_v5, %v1976_v22  ;;  %v758_v9 = vsel %vm513_vm11, %v748_v63, 0.0 }
 0x3b7   : > { %759 = vadd.xlane.f32.xlu1 %v758_v9 }
 0x3b8   : > { %v755_v10 = vsel %vm511_vm12, %v747_v8, 0.0 }
 0x3b9   : > { %756 = vadd.xlane.f32.xlu0 %v755_v10 }
 0x438   : > { %v754_v11 = vpop.xlane.xlu0 %753 }
 0x439   : > { %v762_v15 = vsel %vm236_vm4, %v754_v11, 0.0 }
 0x43c   : > { %v751_v12 = vpop.xlane.xlu0 %750 }
 0x440   : > { %v760_v14 = vpop.xlane.xlu1 %759 }
 0x441   : > { %v763_v16 = vsel %vm236_vm4, %v760_v14, 0.0 }
 0x442   : > { %v764_v17 = vadd.f32 %v763_v16, %v762_v15  ;;  %v757_v18 = vpop.xlane.xlu0 %756 }
 0x443   : > { %v761_v20 = vadd.f32 %v757_v18, %v751_v12 }
 0x444   : > { %v767_v19 = vmul.f32 0.03125, %v764_v17 }
 0x445   : > { %v766_v21 = vmul.f32 0.03125, %v761_v20 }
 0x446   : > { %v769_v23 = vsub.f32 %v746_v54, %v767_v19  ;;  %v771_v22 = vsub.f32 %v748_v63, %v767_v19 }
 0x447   : > { %v768_v24 = vsub.f32 %v745_v56, %v766_v21  ;;  %v770_v25 = vsub.f32 %v747_v8, %v766_v21 }
 0x448   : > { %v773_v26 = vmul.f32 %v769_v23, %v769_v23  ;;  %v775_v29 = vmul.f32 %v771_v22, %v771_v22 }
 0x449   : > { %v772_v27 = vmul.f32 %v768_v24, %v768_v24  ;;  %v774_v31 = vmul.f32 %v770_v25, %v770_v25 }
 0x44a   : > { %v779_v28 = vsel %vm513_vm11, %v773_v26, 0.0  ;;  %v785_v32 = vsel %vm513_vm11, %v775_v29, 0.0 }
 0x44b   : > { %780 = vadd.xlane.f32.xlu1 %v779_v28  ;;  %v776_v30 = vsel %vm511_vm12, %v772_v27, 0.0  ;;  %v782_v33 = vsel %vm511_vm12, %v774_v31, 0.0 }
 0x44c   : > { %777 = vadd.xlane.f32.xlu0 %v776_v30 }
 0x44f   : > { %786 = vadd.xlane.f32.xlu1 %v785_v32 }
 0x450   : > { %783 = vadd.xlane.f32.xlu0 %v782_v33 }
 0x4d4   : > { %v781_v36 = vpop.xlane.xlu1 %780 }
 0x4d5   : > { %v778_v37 = vpop.xlane.xlu0 %777  ;;  %v789_v39 = vsel %vm236_vm4, %v781_v36, 0.0 }
 0x4d8   : > { %v787_v38 = vpop.xlane.xlu1 %786 }
 0x4d9   : > { %v790_v40 = vsel %vm236_vm4, %v787_v38, 0.0  ;;  %v784_v41 = vpop.xlane.xlu0 %783 }
 0x4da   : > { %v791_v42 = vadd.f32 %v790_v40, %v789_v39  ;;  %v788_v43 = vadd.f32 %v784_v41, %v778_v37  ;;  %v1038_v40 = vld [vmem:[%s1866_s9 + $0x38] sm:$0xff] }
 0x4db   : > { %1541 = vmatprep.subr.mxu0 %v1038_v40  ;;  %1546 = vmatprep.subr.mxu1 %v1038_v40 }
 0x4dc   : > { %v793_v44 = vmul.f32 0.03125, %v791_v42  ;;  %v792_v45 = vmul.f32 0.03125, %v788_v43 }
 0x4de   : > { %v795_v46 = vadd.f32 1e-05, %v793_v44  ;;  %v794_v47 = vadd.f32 1e-05, %v792_v45 }
 0x4e0   : > { %1620 = vrsqrt.f32 %v795_v46 }
 0x4e1   : > { %1622 = vrsqrt.f32 %v794_v47 }
 0x4ed   : > { %v1621_v48 = vpop.eup %1620 }
 0x4ee   : > { %v1623_v49 = vpop.eup %1622  ;;  %v799_v50 = vmul.f32 %v1621_v48, %v769_v23  ;;  %v801_v51 = vmul.f32 %v1621_v48, %v771_v22 }
 0x4ef   : > { %v798_v52 = vmul.f32 %v1623_v49, %v768_v24  ;;  %v800_v53 = vmul.f32 %v1623_v49, %v770_v25 }
 0x4f0   : > { %v803_v54 = vmax.f32 %v799_v50, 0.0  ;;  %v805_v55 = vmax.f32 %v801_v51, 0.0 }
 0x4f1   : > { %v802_v56 = vmax.f32 %v798_v52, 0.0  ;;  %v804_v57 = vmax.f32 %v800_v53, 0.0 }
 0x4f3   : > { %1531 = vmatprep.mubr.msk.f32.mxu0 %vm511_vm12, %v802_v56  ;;  %1538 = vmatprep.mubr.msk.f32.mxu1 %vm511_vm12, %v804_v57 }
 0x4f4   : > { %1532 = vmatmul.mubr.msk.f32.vlgmr.msra.gmra.mxu0 %vm511_vm12, %v803_v54  ;;  %1539 = vmatmul.mubr.msk.f32.vlgmr.msra.gmra.mxu1 %vm511_vm12, %v805_v55 }
 0x4f5   : > { %1542 = vmatpush3.msra.mxu0 %v1038_v40  ;;  %1547 = vmatpush3.msra.mxu1 %v1038_v40 }
 0x5b4   : > { %v1533_v62 = vpop.f32.mrf.mxu0  ;;  %v1540_v63 = vpop.f32.mrf.mxu1 }
 0x5b5   : > { %v976_v5 = vadd.f32 %v1533_v62, %v1443_v58  ;;  %v978_v8 = vadd.f32 %v1540_v63, %v1443_v58 }
 0x5b6   : > { %v881_v9 = vpop.f32.mrf.mxu0  ;;  %v962_v10 = vpop.f32.mrf.mxu1 }
 0x5b7   : > { %v975_v11 = vadd.f32 %v1443_v58, %v881_v9  ;;  %v977_v12 = vadd.f32 %v1443_v58, %v962_v10  ;;  %v990_v14 = vsel %vm983_vm14, %v978_v8, 0.0  ;;  %v984_v15 = vsel %vm983_vm14, %v976_v5, 0.0  ;;  %v1448_v9 = vld [vmem:[%s1866_s9 + $0x40] ss:$0 sm:$0xff]  ;;  %s1760_s9 = smov 123  }
 0x5b8   : > { %991 = vadd.xlane.f32.xlu1 %v990_v14  ;;  %985 = vadd.xlane.f32.xlu0 %v984_v15 }
 0x5b9   : > { %v987_v16 = vsel %vm979_vm15, %v977_v12, 0.0  ;;  %v980_v17 = vsel %vm979_vm15, %v975_v11, 0.0 }
 0x5bc   : > { %988 = vadd.xlane.f32.xlu1 %v987_v16  ;;  %981 = vadd.xlane.f32.xlu0 %v980_v17 }
 0x641   : > { %v992_v18 = vpop.xlane.xlu1 %991  ;;  %v986_v20 = vpop.xlane.xlu0 %985 }
 0x642   : > { %v995_v19 = vsel %vm236_vm4, %v992_v18, 0.0  ;;  %v994_v21 = vsel %vm236_vm4, %v986_v20, 0.0 }
 0x643   : > { %v996_v23 = vadd.f32 %v995_v19, %v994_v21 }
 0x645   : > { %v999_v22 = vmul.f32 0.0625, %v996_v23  ;;  %v989_v24 = vpop.xlane.xlu1 %988  ;;  %v982_v25 = vpop.xlane.xlu0 %981 }
 0x646   : > { %v993_v26 = vadd.f32 %v989_v24, %v982_v25 }
 0x647   : > { %v1001_v27 = vsub.f32 %v976_v5, %v999_v22  ;;  %v1003_v28 = vsub.f32 %v978_v8, %v999_v22 }
 0x648   : > { %v998_v29 = vmul.f32 0.0625, %v993_v26 }
 0x649   : > { %v1005_v30 = vmul.f32 %v1001_v27, %v1001_v27  ;;  %v1007_v34 = vmul.f32 %v1003_v28, %v1003_v28 }
 0x64a   : > { %v1000_v31 = vsub.f32 %v975_v11, %v998_v29  ;;  %v1002_v32 = vsub.f32 %v977_v12, %v998_v29 }
 0x64b   : > { %v1011_v33 = vsel %vm983_vm14, %v1005_v30, 0.0  ;;  %v1017_v38 = vsel %vm983_vm14, %v1007_v34, 0.0 }
 0x64c   : > { %1012 = vadd.xlane.f32.xlu1 %v1011_v33  ;;  %v1004_v35 = vmul.f32 %v1000_v31, %v1000_v31  ;;  %v1006_v37 = vmul.f32 %v1002_v32, %v1002_v32 }
 0x64e   : > { %v1008_v36 = vsel %vm979_vm15, %v1004_v35, 0.0  ;;  %v1014_v39 = vsel %vm979_vm15, %v1006_v37, 0.0 }
 0x64f   : > { %1009 = vadd.xlane.f32.xlu0 %v1008_v36 }
 0x650   : > { %1018 = vadd.xlane.f32.xlu1 %v1017_v38 }
 0x653   : > { %1015 = vadd.xlane.f32.xlu0 %v1014_v39 }
 0x6d5   : > { %v1013_v41 = vpop.xlane.xlu1 %1012 }
 0x6d6   : > { %v1021_v44 = vsel %vm236_vm4, %v1013_v41, 0.0 }
 0x6d8   : > { %v1010_v42 = vpop.xlane.xlu0 %1009 }
 0x6d9   : > { %v1019_v43 = vpop.xlane.xlu1 %1018 }
 0x6da   : > { %v1022_v45 = vsel %vm236_vm4, %v1019_v43, 0.0  ;;  %vm1345_vm4 = vcmask 66560  }
 0x6db   : > { %v1023_v46 = vadd.f32 %v1022_v45, %v1021_v44 }
 0x6dc   : > { %v1016_v47 = vpop.xlane.xlu0 %1015 }
 0x6dd   : > { %v1025_v48 = vmul.f32 0.0625, %v1023_v46  ;;  %v1020_v49 = vadd.f32 %v1016_v47, %v1010_v42 }
 0x6df   : > { %v1027_v50 = vadd.f32 1e-05, %v1025_v48  ;;  %v1024_v51 = vmul.f32 0.0625, %v1020_v49 }
 0x6e1   : > { %1624 = vrsqrt.f32 %v1027_v50  ;;  %v1026_v52 = vadd.f32 1e-05, %v1024_v51 }
 0x6e3   : > { %1626 = vrsqrt.f32 %v1026_v52 }
 0x6ee   : > { %v1625_v53 = vpop.eup %1624 }
 0x6ef   : > { %v1031_v55 = vmul.f32 %v1625_v53, %v1001_v27  ;;  %v1033_v56 = vmul.f32 %v1625_v53, %v1003_v28 }
 0x6f0   : > { %v1627_v54 = vpop.eup %1626 }
 0x6f1   : > { %v1030_v57 = vmul.f32 %v1627_v54, %v1000_v31  ;;  %v1032_v58 = vmul.f32 %v1627_v54, %v1002_v32  ;;  %v1035_v5 = vmax.f32 %v1031_v55, 0.0  ;;  %v1037_v8 = vmax.f32 %v1033_v56, 0.0 }
 0x6f3   : > { %v1034_v62 = vmax.f32 %v1030_v57, 0.0  ;;  %v1036_v63 = vmax.f32 %v1032_v58, 0.0 }
 0x6f5   : > { %1543 = vmatprep.mubr.msk.f32.mxu0 %vm979_vm15, %v1034_v62  ;;  %1548 = vmatprep.mubr.msk.f32.mxu1 %vm979_vm15, %v1036_v63 }
 0x6f6   : > { %1544 = vmatmul.mubr.msk.f32.vlgmr.msra.gmra.mxu0 %vm979_vm15, %v1035_v5  ;;  %1549 = vmatmul.mubr.msk.f32.vlgmr.msra.gmra.mxu1 %vm979_vm15, %v1037_v8  ;;  %v1320_v8 = vlaneseq }
 0x7b6   : > { %v1545_v10 = vpop.f32.mrf.mxu0  ;;  %v1550_v11 = vpop.f32.mrf.mxu1 }
 0x7b7   : > { %v2065_v12 = vadd.f32 %v1545_v10, %v1448_v9  ;;  %v2067_v14 = vadd.f32 %v1550_v11, %v1448_v9  ;;  %v1321_v11 = vand.u32 127, %v1320_v8 }
 0x7b8   : > { %v1112_v15 = vpop.f32.mrf.mxu0  ;;  %v1193_v16 = vpop.f32.mrf.mxu1 }
 0x7b9   : > { %v1273_v17 = vand.u32 2147483647, %v2065_v12  ;;  %v1206_v18 = vadd.f32 %v1448_v9, %v1112_v15  ;;  %v1275_v20 = vand.u32 2147483647, %v2067_v14  ;;  %v1208_v19 = vadd.f32 %v1448_v9, %v1193_v16 }
 0x7ba   : > { %v1269_v41 = vmin.f32 %v2065_v12, 0.0  ;;  %v1271_v49 = vmin.f32 %v2067_v14, 0.0  ;;  %v1452_v5 = vmul.f32 -1.442695, %v2067_v14 }
 0x7bb   : > { %v1277_v21 = vsub.f32 0.0, %v1273_v17  ;;  %v1272_v23 = vand.u32 2147483647, %v1206_v18  ;;  %v1279_v22 = vsub.f32 0.0, %v1275_v20  ;;  %v1274_v24 = vand.u32 2147483647, %v1208_v19 }
 0x7bc   : > { %v1268_v47 = vmin.f32 %v1206_v18, 0.0  ;;  %v1270_v54 = vmin.f32 %v1208_v19, 0.0  ;;  %v1449_v62 = vmul.f32 -1.442695, %v1206_v18  ;;  %v1451_v63 = vmul.f32 -1.442695, %v1208_v19 }
 0x7bd   : > { %v1282_v25 = vmul.f32 1.442695, %v1277_v21  ;;  %v1276_v26 = vsub.f32 0.0, %v1272_v23  ;;  %v1286_v27 = vmul.f32 1.442695, %v1279_v22  ;;  %v1278_v28 = vsub.f32 0.0, %v1274_v24 }
 0x7be   : > { %v1323_v20 = vshrl.u32 %v1320_v8, 7  ;;  %v1326_v21 = vadd.s32 4294967288, %v1321_v11 }
 0x7bf   : > { %1628 = vpow2.f32 %v1282_v25  ;;  %v1280_v29 = vmul.f32 1.442695, %v1276_v26  ;;  %v1284_v30 = vmul.f32 1.442695, %v1278_v28 }
 0x7c0   : > { %1630 = vpow2.f32 %v1286_v27  ;;  %v1324_v22 = vsub.s32 %v1321_v11, %v1323_v20  ;;  %v1234_v27 = vsub.f32 1.0, %v1923_v59 }
 0x7c1   : > { %1632 = vpow2.f32 %v1280_v29 }
 0x7c2   : > { %1634 = vpow2.f32 %v1284_v30 }
 0x7cc   : > { %v1629_v31 = vpop.eup %1628 }
 0x7cd   : > { %v1631_v32 = vpop.eup %1630  ;;  %v1289_v33 = vadd.f32 1.0, %v1629_v31 }
 0x7ce   : > { %v1633_v34 = vpop.eup %1632  ;;  %v1291_v35 = vadd.f32 1.0, %v1631_v32 }
 0x7cf   : > { %v1635_v36 = vpop.eup %1634  ;;  %1636 = vlog2.f32 %v1289_v33  ;;  %v1288_v37 = vadd.f32 1.0, %v1633_v34 }
 0x7d0   : > { %1638 = vlog2.f32 %v1291_v35  ;;  %v1290_v38 = vadd.f32 1.0, %v1635_v36 }
 0x7d1   : > { %1640 = vlog2.f32 %v1288_v37 }
 0x7d2   : > { %1642 = vlog2.f32 %v1290_v38 }
 0x7d3   : > { %1644 = vpow2.f32 %v1449_v62 }
 0x7d4   : > { %1646 = vpow2.f32 %v1451_v63 }
 0x7d5   : > { %1648 = vpow2.f32 %v1452_v5 }
 0x7dc   : > { %v1637_v39 = vpop.eup %1636 }
 0x7dd   : > { %v1639_v40 = vpop.eup %1638  ;;  %v1295_v42 = vmul.f32 0.6931472, %v1637_v39 }
 0x7de   : > { %v1641_v43 = vpop.eup %1640  ;;  %v1299_v44 = vmul.f32 0.6931472, %v1639_v40 }
 0x7df   : > { %v1643_v45 = vpop.eup %1642  ;;  %v1301_v46 = vsub.f32 %v1269_v41, %v1295_v42  ;;  %v1293_v48 = vmul.f32 0.6931472, %v1641_v43  ;;  %v1235_v43 = vsub.f32 1.0, %v1938_v2  ;;  %v1450_v2 = vmul.f32 -1.442695, %v2065_v12 }
 0x7e0   : > { %v1297_v50 = vmul.f32 0.6931472, %v1643_v45  ;;  %v1303_v53 = vsub.f32 %v1271_v49, %v1299_v44  ;;  %v1645_v9 = vpop.eup %1644 }
 0x7e1   : > { %v1307_v51 = vsel %vm225_vm2, %v1301_v46, 0.0  ;;  %v1300_v52 = vsub.f32 %v1268_v47, %v1293_v48  ;;  %v1222_v10 = vadd.f32 1.0, %v1645_v9  ;;  %v1647_v15 = vpop.eup %1646 }
 0x7e2   : > { %1308 = vadd.xlane.f32.xlu1 %v1307_v51  ;;  %v1302_v56 = vsub.f32 %v1270_v54, %v1297_v50  ;;  %v1313_v57 = vsel %vm225_vm2, %v1303_v53, 0.0  ;;  %v1649_v16 = vpop.eup %1648  ;;  %v1224_v17 = vadd.f32 1.0, %v1647_v15 }
 0x7e3   : > { %v1304_v55 = vsel %vm221_vm3, %v1300_v52, 0.0  ;;  %1650 = vrcp.f32 %v1222_v10  ;;  %v1225_v24 = vadd.f32 1.0, %v1649_v16 }
 0x7e4   : > { %1305 = vadd.xlane.f32.xlu0 %v1304_v55  ;;  %v1310_v58 = vsel %vm221_vm3, %v1302_v56, 0.0  ;;  %1652 = vrcp.f32 %v1224_v17  ;;  %v1349_v56 = vld [vmem:[#allocation6] sm:$0x3] }
 0x7e5   : > { %1654 = vrcp.f32 %v1225_v24 }
 0x7e6   : > { %1314 = vadd.xlane.f32.xlu1 %v1313_v57  ;;  %1656 = vpow2.f32 %v1450_v2 }
 0x7e8   : > { %1311 = vadd.xlane.f32.xlu0 %v1310_v58 }
 0x7f0   : > { %v1651_v38 = vpop.eup %1650 }
 0x7f1   : > { %v1653_v44 = vpop.eup %1652 }
 0x7f2   : > { %v1655_v47 = vpop.eup %1654 }
 0x7f7   : > { %1240 = vrot.lane.b32.xlu1 %v1206_v18, %s1760_s9 }
 0x7fb   : > { %1244 = vrot.lane.b32.xlu1 %v1208_v19, %s1760_s9  ;;  %v1329_v19 = vsub.s32 %v1326_v21, %v1323_v20 }
 0x7ff   : > { %1246 = vrot.lane.b32.xlu1 %v2067_v14, %s1760_s9 }
 0x86b   : > { %v1309_v23 = vpop.xlane.xlu1 %1308 }
 0x86c   : > { %v1330_v28 = vrot.slane %v1309_v23, %v1329_v19 }
 0x86d   : > { %v1306_v18 = vpop.xlane.xlu0 %1305 }
 0x86e   : > { %v1325_v14 = vrot.slane %v1306_v18, %v1324_v22 }
 0x86f   : > { %v1315_v25 = vpop.xlane.xlu1 %1314 }
 0x870   : > { %v1340_v29 = vrot.slane %v1315_v25, %v1329_v19  ;;  %v1332_v33 = vsel %vm1331_vm0, %v1330_v28, %v1325_v14 }
 0x871   : > { %v1312_v26 = vpop.xlane.xlu0 %1311 }
 0x872   : > { %v1336_v30 = vrot.slane %v1312_v26, %v1324_v22 }
 0x873   : > { %v1241_v31 = vpop.permute.xlu1 %1240 }
 0x874   : > { %v1252_v32 = vadd.f32 %v1241_v31, %v1925_v60  ;;  %v1341_v34 = vsel %vm1331_vm0, %v1340_v29, %v1336_v30 }
 0x875   : > { %v1343_v35 = vsel %vm1342_vm1, %v1341_v34, %v1332_v33 }
 0x876   : > { %v1256_v36 = vmul.f32 %v1252_v32, %v1234_v27  ;;  %v1346_v37 = vsel %vm1345_vm4, %v1343_v35, 0.0 }
 0x877   : > { %v1245_v39 = vpop.permute.xlu1 %1244  ;;  %1347 = vadd.xlane.f32.xlu0 %v1346_v37 }
 0x878   : > { %v1260_v40 = vmul.f32 %v1651_v38, %v1256_v36  ;;  %v1254_v59 = vadd.f32 %v1245_v39, %v1927_v61 }
 0x87a   : > { %v1264_v41 = vadd.f32 %v1260_v40, %v1931_v0  ;;  %v1258_v42 = vmul.f32 %v1254_v59, %v1234_v27 }
 0x87b   : > { %v1247_v45 = vpop.permute.xlu1 %1246 }
 0x87c   : > { %1353 = vst.msk [vmem:[%s2141_s3] sm:$0xff] %vm221_vm3, %v1264_v41  ;;  %v1262_v60 = vmul.f32 %v1653_v44, %v1258_v42  ;;  %v1255_v46 = vadd.f32 %v1247_v45, %v1942_v4 }
 0x87e   : > { %v1266_v48 = vadd.f32 %v1262_v60, %v1935_v1  ;;  %v1259_v49 = vmul.f32 %v1255_v46, %v1235_v43  ;;  %v302_v1 = vrot.slane %v1961_v13, 4 }
 0x880   : > { %1355 = vst.msk [vmem:[%s2141_s3 + $0x10] sm:$0xff] %vm221_vm3, %v1266_v48  ;;  %v1263_v61 = vmul.f32 %v1655_v47, %v1259_v49  ;;  %v303_v4 = vadd.f32 %v302_v1, %v1961_v13 }
 0x882   : > { %v1267_v0 = vadd.f32 %v1263_v61, %v1954_v7  ;;  %v304_v50 = vrot.slane %v303_v4, 2  ;;  %v1657_v7 = vpop.eup %1656 }
 0x883   : > { %v1223_v53 = vadd.f32 1.0, %v1657_v7 }
 0x884   : > { %1356 = vst.msk [vmem:[%s2141_s3 + $0x18] sm:$0x1] %vm225_vm2, %v1267_v0  ;;  %v305_v51 = vadd.f32 %v304_v50, %v303_v4 }
 0x885   : > { %1658 = vrcp.f32 %v1223_v53 }
 0x886   : > { %v306_v52 = vrot.slane %v305_v51, 1 }
 0x888   : > { %v307_v54 = vadd.f32 %v306_v52, %v305_v51 }
 0x88a   : > { %v308_v55 = vmul.f32 5.0, %v307_v54 }
 0x88c   : > { %v1350_v57 = vadd.f32 %v1349_v56, %v308_v55 }
 0x88d   : > { %1242 = vrot.lane.b32.xlu0 %v2065_v12, %s1760_s9 }
 0x900   : > { %v1348_v12 = vpop.xlane.xlu0 %1347 }
 0x901   : > { %v1351_v58 = vadd.f32 %v1350_v57, %v1348_v12 }
 0x903   : > { %1352 = vst [vmem:[#allocation6] sm:$0x3] %v1351_v58 }
 0x904   : > { %v1243_v62 = vpop.permute.xlu0 %1242 }
 0x905   : > { %1701 = shalt.err (!%p1698_p10)
}
 0x906   : > { %1557 = dma.vmem_to_hbm [thread:$0]  (%p1565_p8), %s1368_s7, 32, %s2142_s4, [#allocation5]   ;;  %v1253_v13 = vadd.f32 %v1243_v62, %v1940_v3  ;;  %v1659_v5 = vpop.eup %1658 }
 0x908   : > { %v1257_v63 = vmul.f32 %v1253_v13, %v1235_v43 }
 0x90a   : > { %v1261_v8 = vmul.f32 %v1659_v5, %v1257_v63 }
 0x90c   : > { %v1265_v9 = vadd.f32 %v1261_v8, %v1950_v6 }
 0x90e   : > { %1354 = vst.msk [vmem:[%s2141_s3 + $0x8] sm:$0x1] %vm225_vm2, %v1265_v9 }
 0x90f   : > { %1733 = dma.done.wait (%p1565_p8), [#allocation5], 32  }
 0x910   : > { %1735 = vsyncadd (%p1565_p8), [#allocation5], 4294967264 }
 0x911 PF: > { %p16_p12 = scmp.ge.s32.totalorder %s1809_s20, 6   ;;  %s2148_s15 = smov %s1742_s16 }
 0x912   : > { %s2149_s16 = smov %s1746_s17  ;;  %s2150_s17 = smov %s1819_s23 }
 0x913   : > { %s2151_s18 = smov %s1809_s20  ;;  %18 = sbr.rel (!%p16_p12) target bundleno = 4 (0x4), region = 81 }
 0x918   :  { %1383 = vsyncpa [#allocation4], 1 }
 0x919   :  { %1385 = vsyncpa [#allocation4 + $0x1], 1 }
 0x91a   :  { %1386 = vsyncpa [#allocation5], 1 }
 0x91b   :  { %1388 = vsyncpa [#allocation5 + $0x1], 1 }

</bundles_post_ra>
